<compile_context>
chip_gen: v6e
topology: v6e:2x2x1
jax: 0.10.0
libtpu: 0.0.40
codegen_flags: <defaults>
</compile_context>

<pallas_src>
import math
import functools

import numpy as np
import jax
import jax.numpy as jnp
from jax.experimental import pallas as pl
from jax.experimental.pallas import tpu as pltpu


def _round_up(v, m):
    return ((v + m - 1) // m) * m


def _projection_kernel(x_ref, w_ref, h_ref, f12_ref, *, out_features):
    """proj = x_aug @ W_aug on the MXU (f32 accumulation).

    h_ref   (TM, Hp)  mxu_dtype : projected features (+ f1/f2/ones/pad columns)
    f12_ref (TM, 2)   f32       : [f1 | f2] from the f32 accumulator (full precision)
    """
    acc = jnp.dot(x_ref[...], w_ref[...], preferred_element_type=jnp.float32)
    h_ref[...] = acc.astype(h_ref.dtype)
    f12_ref[...] = acc[:, out_features:out_features + 2]


def _attention_kernel(f1_ref, f2_ref, adj_ref, h_ref, out_ref, *,
                      alpha, concat, ones_col, mxu_dtype, softmax_dtype,
                      recip_approx):
    """One row tile of masked-softmax attention + aggregation.

    f1_ref:  (TM, 1)   f32   a1 . h[i]  for the rows of this tile
    f2_ref:  (1, Np)   f32   a2 . h[j]  for all columns (grid-invariant)
    adj_ref: (TM, Np)  int8  adjacency tile (>0 means edge)
    h_ref:   (Np, Hp)  mxu   projected features (column `ones_col` is all ones)
    out_ref: (TM, Hp)  f32   output tile (lane-dense)
    """
    neg_big = jnp.float32(-1.0e12)

    e = f1_ref[...] + f2_ref[...]                      # (TM, Np) broadcast add, f32
    e = jnp.maximum(e, alpha * e)                      # LeakyReLU(alpha)

    # Mask directly against the int8 tile (no f32 widen of adj).
    masked = jnp.where(adj_ref[...] > 0, e, neg_big)

    # Numerically-stable exp; subtract + exp in softmax_dtype (bf16 on v6e/v7x).
    m = jnp.max(masked, axis=1, keepdims=True)         # only remaining XLU reduction
    z = masked.astype(softmax_dtype) - m.astype(softmax_dtype)
    p = jnp.exp(z)                                     # (TM, Np), UN-normalized

    # Aggregate un-normalized weights on the MXU; the all-ones column of h makes
    # h_prime[:, ones_col] == sum_j p[i, j] (softmax denominator) for free.
    h_prime = jnp.dot(p.astype(mxu_dtype), h_ref[...],
                      preferred_element_type=jnp.float32)          # (TM, Hp)
    denom = h_prime[:, ones_col:ones_col + 1]                      # (TM, 1)
    h_prime = h_prime * pl.reciprocal(denom, approx=recip_approx)  # normalize post-matmul

    if concat:
        # ELU(alpha=1); clamp the exp argument so no inf enters the select.
        neg_branch = jnp.exp(jnp.minimum(h_prime, 0.0)) - 1.0
        h_prime = jnp.where(h_prime > 0, h_prime, neg_branch)
    out_ref[...] = h_prime.astype(out_ref.dtype)


def _stage2_vmem_bytes(tm, np_, hp, mxu_bytes):
    return (2 * tm * np_                   # int8 adjacency tile, double-buffered
            + 2 * np_ * hp * mxu_bytes     # resident projected features (2 bufs default)
            + 2 * tm * hp * 4              # f32 output tile, double-buffered
            + 2 * (tm + np_) * 4)          # f1 column / f2 row


def graph_attention_layer(x, adj, W, a, *, alpha=0.2, concat=True,
                          mxu_dtype=jnp.bfloat16, softmax_dtype=None,
                          tile_rows=256):
    """Single-head GAT forward (eval mode).

    x:   [N, F]    node features
    adj: [N, N]    adjacency (>0 means edge)
    W:   [F, H]    projection
    a:   [2H, 1]   attention vector (a1 = a[:H], a2 = a[H:])
    Returns [N, H] (= F.elu(attention @ (x @ W)) when concat=True).

    mxu_dtype:     operand dtype for the MXU matmuls (bf16 fast path / f32 exact path).
    softmax_dtype: dtype for the max-subtract + exp phase; defaults to mxu_dtype.
                   Pass jnp.float32 on v5e (no bf16 VPU/EUP there).

    Note: rows with zero edges (and the Np-N padded rows) get a uniform distribution
    over the padded node count (the PyTorch reference gives uniform over N); add
    self-loops to avoid fully-disconnected rows.
    """
    f32 = jnp.float32
    if softmax_dtype is None:
        softmax_dtype = mxu_dtype

    N, F = x.shape
    Fw, H = W.shape
    assert Fw == F, "W must be [in_features, out_features]"
    a = jnp.reshape(a, (2 * H,)).astype(f32)
    a1, a2 = a[:H], a[H:]

    # Lane-dense projected width; reserve columns for f1 / f2 / ones.
    Hp = _round_up(H + 3, 128)
    ones_col = H + 2
    # Pad the contraction dim (F features + 1 ones column) for aligned MXU operands.
    Fp = _round_up(F + 1, 128)

    mxu_bytes = int(np.dtype(mxu_dtype).itemsize)

    # Row padding / tile selection: Np is a multiple of 128 (lane-dense adj tiles),
    # TM a multiple of 32 (int8 sublane packing) dividing Np, sized to fit the VMEM
    # cap (v7x has only 64 MiB physical VMEM) and to give >=2 tiles when possible
    # so the "parallel" axis balances across v7x's two TensorCores.
    VMEM_CAP = 52 * 1024 * 1024
    Np = _round_up(N, 128)
    tm_cap = min(int(tile_rows), max(32, Np // 2))
    TM = 32
    for cand in range(_round_up(tm_cap, 32), 31, -32):
        if Np % cand == 0 and _stage2_vmem_bytes(cand, Np, Hp, mxu_bytes) <= VMEM_CAP:
            TM = cand
            break
    n_tiles = Np // TM

    x = x.astype(f32)
    W = W.astype(f32)

    # Fold a1/a2 and the ones column into the projection matmul.
    wa1 = W @ a1                                        # (F,)
    wa2 = W @ a2                                        # (F,)
    W_aug = jnp.zeros((Fp, Hp), f32)
    W_aug = W_aug.at[:F, :H].set(W)
    W_aug = W_aug.at[:F, H].set(wa1)
    W_aug = W_aug.at[:F, H + 1].set(wa2)
    W_aug = W_aug.at[F, ones_col].set(1.0)              # x_aug ones column -> h ones column

    # Padded inputs (padded rows/cols have no edges and are sliced away at the end).
    x_pad = jnp.zeros((Np, Fp), f32).at[:N, :F].set(x).at[:, F].set(1.0)
    adj_q = jnp.zeros((Np, Np), jnp.int8).at[:N, :N].set((adj > 0).astype(jnp.int8))

    # VMEM budget: actual need + headroom, capped below v7x's 64 MiB physical VMEM.
    stage1_bytes = (2 * TM * Fp * mxu_bytes + 2 * Fp * Hp * mxu_bytes
                    + 2 * TM * Hp * mxu_bytes + 2 * TM * 2 * 4)
    need = max(stage1_bytes, _stage2_vmem_bytes(TM, Np, Hp, mxu_bytes)) + 4 * 1024 * 1024
    vmem_limit = int(min(max(need, 16 * 1024 * 1024), 56 * 1024 * 1024))

    compiler_params = pltpu.CompilerParams(
        dimension_semantics=("parallel",),
        vmem_limit_bytes=vmem_limit,
    )

    # ---------------- Stage 1: projection ----------------
    proj_kernel = functools.partial(_projection_kernel, out_features=H)
    h_in, f12 = pl.pallas_call(
        proj_kernel,
        out_shape=(jax.ShapeDtypeStruct((Np, Hp), mxu_dtype),
                   jax.ShapeDtypeStruct((Np, 2), f32)),
        grid_spec=pltpu.PrefetchScalarGridSpec(
            num_scalar_prefetch=0,
            grid=(n_tiles,),
            in_specs=[
                pl.BlockSpec((TM, Fp), lambda i: (i, 0)),     # x_aug row tile
                pl.BlockSpec((Fp, Hp), lambda i: (0, 0)),     # W_aug (resident)
            ],
            out_specs=(
                pl.BlockSpec((TM, Hp), lambda i: (i, 0)),     # projected features (mxu dtype)
                pl.BlockSpec((TM, 2), lambda i: (i, 0)),      # [f1 | f2] in f32
            ),
        ),
        compiler_params=compiler_params,
    )(x_pad.astype(mxu_dtype), W_aug.astype(mxu_dtype))

    f1 = f12[:, 0:1]                                     # (Np, 1)  f32
    f2_row = f12[:, 1:2].T                               # (1, Np)  f32

    # ---------------- Stage 2: row-tiled attention ----------------
    attn_kernel = functools.partial(
        _attention_kernel, alpha=float(alpha), concat=bool(concat),
        ones_col=ones_col, mxu_dtype=mxu_dtype, softmax_dtype=softmax_dtype,
        recip_approx=bool(mxu_dtype != jnp.float32))

    out_pad = pl.pallas_call(
        attn_kernel,
        out_shape=jax.ShapeDtypeStruct((Np, Hp), f32),
        grid_spec=pltpu.PrefetchScalarGridSpec(
            num_scalar_prefetch=0,
            grid=(n_tiles,),
            in_specs=[
                pl.BlockSpec((TM, 1), lambda i: (i, 0)),      # f1 per row tile
                pl.BlockSpec((1, Np), lambda i: (0, 0)),      # f2 row (grid-invariant)
                pl.BlockSpec((TM, Np), lambda i: (i, 0)),     # adj tile (int8)
                pl.BlockSpec((Np, Hp), lambda i: (0, 0)),     # h (grid-invariant)
            ],
            out_specs=pl.BlockSpec((TM, Hp), lambda i: (i, 0)),
        ),
        compiler_params=compiler_params,
    )(f1, f2_row, adj_q, h_in)

    return out_pad[:N, :H]


def _xavier_uniform(key, shape, gain):
    fan_in, fan_out = shape[-2], shape[-1]
    bound = gain * math.sqrt(6.0 / (fan_in + fan_out))
    return jax.random.uniform(key, shape, jnp.float32, minval=-bound, maxval=bound)


def _reference(x, adj, W, a, alpha):
    """Pure-JAX f32 reference of the PyTorch forward (eval mode, concat=True)."""
    H = W.shape[1]
    h = x @ W
    a_flat = jnp.reshape(a, (-1,))
    a1, a2 = a_flat[:H], a_flat[H:]
    e = (h @ a1)[:, None] + (h @ a2)[None, :]
    e = jnp.where(e > 0, e, alpha * e)
    att = jnp.where(adj > 0, e, -1.0e12)
    att = jax.nn.softmax(att, axis=1)
    hp = att @ h
    return jnp.where(hp > 0, hp, jnp.exp(hp) - 1.0)


if __name__ == "__main__":
    # Small shapes consistent with the module: N nodes, in_features -> out_features.
    N, n_feat, n_hid = 100, 40, 16
    alpha = 0.2
    gain = 1.414

    key = jax.random.PRNGKey(0)
    kx, kadj, kW, ka = jax.random.split(key, 4)

    x = jax.random.normal(kx, (N, n_feat), jnp.float32)
    adj = (jax.random.uniform(kadj, (N, N)) > 0.6).astype(jnp.float32)
    adj = jnp.maximum(adj, jnp.eye(N, dtype=jnp.float32))   # self loops

    W = _xavier_uniform(kW, (n_feat, n_hid), gain)
    a = _xavier_uniform(ka, (2 * n_hid, 1), gain)

    ref = _reference(x, adj, W, a, alpha)

    # Fast path (v6e/v7x): bf16 MXU + bf16 softmax, int8 adjacency, TM=32 (4 row tiles,
    # exercises both tiling and N -> 128 padding).
    out_bf16 = graph_attention_layer(x, adj, W, a, alpha=alpha,
                                     mxu_dtype=jnp.bfloat16, tile_rows=32)
    out_bf16 = jax.block_until_ready(out_bf16)
    assert out_bf16.shape == (N, n_hid)
    assert bool(jnp.all(jnp.isfinite(out_bf16)))
    rel = jnp.linalg.norm(out_bf16 - ref) / jnp.linalg.norm(ref)
    assert float(rel) < 0.15, f"bf16 path relative error too large: {float(rel)}"

    # v5e-style path: bf16 MXU operands but f32 softmax (no bf16 VPU/EUP on v5e).
    out_v5e = graph_attention_layer(x, adj, W, a, alpha=alpha,
                                    mxu_dtype=jnp.bfloat16,
                                    softmax_dtype=jnp.float32, tile_rows=32)
    out_v5e = jax.block_until_ready(out_v5e)
    assert bool(jnp.all(jnp.isfinite(out_v5e)))
    rel5 = jnp.linalg.norm(out_v5e - ref) / jnp.linalg.norm(ref)
    assert float(rel5) < 0.15, f"v5e path relative error too large: {float(rel5)}"

    # Exact path: f32 MXU + f32 softmax + exact reciprocal, default tiling (TM=64, 2 tiles).
    out_f32 = graph_attention_layer(x, adj, W, a, alpha=alpha,
                                    mxu_dtype=jnp.float32)
    out_f32 = jax.block_until_ready(out_f32)
    assert out_f32.shape == (N, n_hid)
    assert jnp.allclose(out_f32, ref, atol=1e-2, rtol=1e-2), "f32 path mismatch vs reference"

    print("KERNEL_OK")
</pallas_src>

<mosaic_0001>
module attributes {stable_mosaic.version = 11 : i64} {
  func.func @_projection_kernel(%arg0: i32, %arg1: memref<32x128xbf16, #tpu.memory_space<vmem>>, %arg2: memref<128x128xbf16, #tpu.memory_space<vmem>>, %arg3: memref<32x128xbf16, #tpu.memory_space<vmem>>, %arg4: memref<32x2xf32, #tpu.memory_space<vmem>>) attributes {dimension_semantics = [#tpu.dimension_semantics<parallel>], iteration_bounds = array<i64: 4>, scalar_prefetch = 0 : i64, scratch_operands = 0 : i64, tpu.core_type = #tpu.core_type<tc>, window_params = [{transform_indices = @transform_0, window_bounds = array<i64: 32, 128>}, {pipeline_mode = #tpu.pipeline_mode<synchronous>, transform_indices = @transform_1, window_bounds = array<i64: 128, 128>}, {transform_indices = @transform_2, window_bounds = array<i64: 32, 128>}, {transform_indices = @transform_3, window_bounds = array<i64: 32, 2>}]} {
    %c0 = arith.constant 0 : index
    %c0_0 = arith.constant 0 : index
    %0 = vector.load %arg1[%c0, %c0_0] : memref<32x128xbf16, #tpu.memory_space<vmem>>, vector<32x128xbf16>
    %c0_1 = arith.constant 0 : index
    %c0_2 = arith.constant 0 : index
    %1 = vector.load %arg2[%c0_1, %c0_2] : memref<128x128xbf16, #tpu.memory_space<vmem>>, vector<128x128xbf16>
    %cst = arith.constant dense<0.000000e+00> : vector<32x128xf32>
    %2 = tpu.matmul %0, %1, %cst {dimension_numbers = #tpu.dot_dimension_numbers<[1], [0], [0], [1], [0, 0, 1, 1], [], []>} : vector<32x128xbf16>, vector<128x128xbf16>, vector<32x128xf32> -> vector<32x128xf32>
    %3 = arith.truncf %2 : vector<32x128xf32> to vector<32x128xbf16>
    %c0_3 = arith.constant 0 : index
    %c0_4 = arith.constant 0 : index
    %4 = vector.load %arg3[%c0_3, %c0_4] : memref<32x128xbf16, #tpu.memory_space<vmem>>, vector<32x128xbf16>
    tpu.vector_store %arg3[%c0_3, %c0_4], %3 {strides = array<i32>} : memref<32x128xbf16, #tpu.memory_space<vmem>>, vector<32x128xbf16>,
    %5 = vector.extract_strided_slice %2 {offsets = [0, 16], sizes = [32, 2], strides = [1, 1]} : vector<32x128xf32> to vector<32x2xf32>
    %c0_5 = arith.constant 0 : index
    %c0_6 = arith.constant 0 : index
    %6 = vector.load %arg4[%c0_5, %c0_6] : memref<32x2xf32, #tpu.memory_space<vmem>>, vector<32x2xf32>
    tpu.vector_store %arg4[%c0_5, %c0_6], %5 {strides = array<i32>} : memref<32x2xf32, #tpu.memory_space<vmem>>, vector<32x2xf32>,
    return
  }
  func.func @transform_0(%arg0: i32) -> (i32, i32) {
    %c0_i32 = arith.constant 0 : i32
    %c0_i32_0 = arith.constant 0 : i32
    return %arg0, %c0_i32 : i32, i32
  }
  func.func @transform_1(%arg0: i32) -> (i32, i32) {
    %c0_i32 = arith.constant 0 : i32
    %c0_i32_0 = arith.constant 0 : i32
    %c0_i32_1 = arith.constant 0 : i32
    return %c0_i32, %c0_i32_0 : i32, i32
  }
  func.func @transform_2(%arg0: i32) -> (i32, i32) {
    %c0_i32 = arith.constant 0 : i32
    %c0_i32_0 = arith.constant 0 : i32
    return %arg0, %c0_i32 : i32, i32
  }
  func.func @transform_3(%arg0: i32) -> (i32, i32) {
    %c0_i32 = arith.constant 0 : i32
    %c0_i32_0 = arith.constant 0 : i32
    return %arg0, %c0_i32 : i32, i32
  }
}

</mosaic_0001>

<bundles_post_ra>
// kernel: tpu_custom_call.1
= control target key start
LH: loop header
LB: loop body
LE: loop exit
PB: predicated region body
PF: predicated region fallthrough
CT: control target
= control target key end

     0   :  { %9 = vsyncpa [#allocation3], 0  ;;  %s1014_s0 = inlined_call_operand.hbm [shape: bf16[128,128], index: 0, kind: input, shape index: {}]   ;;  %s1015_s1 = inlined_call_operand.hbm [shape: bf16[128,128], index: 1, kind: input, shape index: {}]   ;;  %s1016_s2 = inlined_call_operand.hbm [shape: bf16[128,128], index: 2, kind: output, shape index: {0}]   ;;  %s1017_s3 = inlined_call_operand.vmem [shape: f32[128,2], index: 3, kind: output, shape index: {1}]  }
   0x1   :  { %11 = vsyncpa [#allocation3 + $0x1], 0 }
   0x2   :  { %12 = vsyncpa [#allocation6], 0 }
   0x3   :  { %13 = vsyncpa [#allocation4], 0 }
   0x4   :  { %15 = vsyncpa [#allocation4 + $0x1], 0  ;;  %s825_s12 = smov 0   ;;  %s827_s13 = smov 0  }
   0x5   :  { %s829_s14 = smov 0   ;;  %s831_s15 = smov 0  }
   0x6 LB: > { %s846_s16 = sadd.s32 4294967295, %s795_s15   ;;  %s522_s17 = sadd.s32 4294967294, %s795_s15   ;;  %s795_s15 = sphi %s831_s15, %s1038_s15   ;;  %s791_s14 = sphi %s829_s14, %s1037_s14   ;;  %s787_s13 = sphi %s827_s13, %s1036_s13   ;;  %s783_s12 = sphi %s825_s12, %s1035_s12  }
   0x7   : > { %p41_p0 = scmp.ne.s32.totalorder %s787_s13, %s783_s12  ;;  %p1018_p1 = scmp.eq.s32.totalorder %s846_s16, 0 }
   0x8   : > { %p92_p3 = scmp.eq.s32.totalorder %s522_s17, 3  ;;  %p523_p5 = scmp.ge.s32.totalorder %s795_s15, 1 }
   0x9   : > { %p855_p4 = por %p1018_p1, %p41_p0  ;;  %p125_p7 = scmp.lt.s32.totalorder %s795_s15, 5 }
   0xa   : > { %p860_p6 = por %p92_p3, %p41_p0  ;;  %s797_s21 = smov [#allocation5]  }
   0xb   : > { %s1022_s18 = scalar_select %p855_p4, 1, 0 }
   0xc   : > { %s1023_s19 = scalar_select %p860_p6, 1, 0 }
   0xd   : > { %p865_p8 = pnand %p523_p5, %p125_p7  ;;  %s137_s22 = sshll.u32 %s797_s21, 4  ;;  %s138_s22 = int_to_ptr.vmem [resolvable:$true] %s137_s22 }
   0xe   : > { %s878_s24 = sadd.s32 1, %s795_s15   ;;  %s28_s25 = sadd.s32 1, %s791_s14 }
   0xf   : > { %s1024_s20 = scalar_select %p865_p8, 1, 0 }
  0x10   : > { %p609_p9 = pneg %p865_p8  ;;  %s25_s26 = ssub.s32 %s795_s15, %s878_s24 }
  0x11   : > { %s684_s27 = scalar_lea.vmem %s138_s22, 1024  ;;  %p692_p3 = scmp.lt.s32.totalorder %s138_s22, %s138_s22 }
  0x12   : > { %p873_p10 = pnand %p609_p9, %p1018_p1  ;;  %p685_p12 = scmp.ne.s32.totalorder %s138_s22, %s684_s27 }
  0x13   : > { %p693_p5 = scmp.lt.s32.totalorder %s684_s27, %s684_s27 }
  0x14   : > { %p675_p11 = pneg %p873_p10 }
  0x15   : > { %p694_p7 = por %p693_p5, %p692_p3 }
  0x16   : > { %p687_p13 = pnand %p685_p12, %p675_p11 }
  0x18   : > { %p688_p0 = pneg %p687_p13 }
  0x1a   : > { %p695_p2 = pnand %p694_p7, %p688_p0 }
  0x1c   : > { %698 = shalt.err (!%p695_p2)
}
  0x1d   : > { %s798_s28 = smov 64   ;;  %s799_s29 = smov 4  }
  0x1e   : > { %612 = dma.hbm_to_vmem [thread:$0]  (!%p873_p10), %s1015_s1, 1024, %s138_s22, [#allocation6], %s798_s28, %s798_s28, %s799_s29  }
  0x1f   : > { %p26_p2 = scmp.eq.s32.totalorder %s25_s26, 0  ;;  %p35_p9 = scmp.ne.s32.totalorder %s791_s14, %s787_s13 }
  0x20   : > { %p36_p11 = scmp.eq.s32.totalorder %s795_s15, 0  ;;  %p622_p12 = scmp.lt.s32.totalorder %s795_s15, 4 }
  0x21   : > { %s898_s5 = scalar_select %p26_p2, %s791_s14, %s28_s25  }
  0x22   : > { %p37_p13 = por %p36_p11, %p35_p9  ;;  %p1026_p0 = scmp.eq.s32.totalorder %s846_s16, 3 }
  0x23   : > { %s151_s7 = sand.u32 1, %s791_s14   ;;  %s554_s8 = sshll.u32 %s795_s15, 8 }
  0x24   : > { %p902_p3 = por %p1026_p0, %p35_p9  ;;  %s526_s9 = sshll.u32 %s151_s7, 4 }
  0x25   : > { %s911_s17 = scalar_lea.hbm %s1014_s0, %s554_s8  ;;  %s155_s21 = scalar_lea.vmem [#allocation2], %s526_s9 }
  0x26   : > { %s1027_s6 = scalar_select %p902_p3, 1, 0 }
  0x27   : > { %s162_s22 = sshll.u32 %s155_s21, 4  ;;  %p913_p10 = pnand %p622_p12, %p37_p13  ;;  %s917_s22 = int_to_ptr.vmem [resolvable:$true] %s162_s22 }
  0x28   : > { %s919_s25 = scalar_lea.sflag [#allocation3], %s151_s7  ;;  %s699_s26 = scalar_lea.hbm %s911_s17, 256 }
  0x29   : > { %p700_p5 = scmp.ne.s32.totalorder %s911_s17, %s699_s26  ;;  %p701_p7 = pneg %p913_p10 }
  0x2a   : > { %s704_s4 = scalar_lea.hbm %s1014_s0, 1024  ;;  %p705_p11 = scmp.lt.s32.totalorder %s911_s17, %s1014_s0 }
  0x2b   : > { %p702_p2 = pnand %p701_p7, %p700_p5  ;;  %p706_p12 = scmp.lt.s32.totalorder %s704_s4, %s699_s26 }
  0x2d   : > { %p703_p9 = pneg %p702_p2  ;;  %p707_p13 = por %p706_p12, %p705_p11 }
  0x2f   : > { %p708_p0 = pnand %p707_p13, %p703_p9 }
  0x31   : > { %711 = shalt.err (!%p708_p0)
}
  0x32   : > { %s712_s7 = scalar_lea.vmem %s917_s22, 256  ;;  %s800_s10 = smov [#allocation2]  }
  0x33   : > { %p713_p1 = scmp.ne.s32.totalorder %s917_s22, %s712_s7  ;;  %s717_s11 = sshll.u32 %s800_s10, 4  ;;  %s718_s11 = int_to_ptr.vmem [resolvable:$false] %s717_s11 }
  0x34   : > { %s719_s21 = scalar_lea.vmem %s718_s11, 512  ;;  %p720_p2 = scmp.lt.s32.totalorder %s917_s22, %s718_s11 }
  0x35   : > { %p715_p6 = pnand %p713_p1, %p701_p7  ;;  %p721_p3 = scmp.lt.s32.totalorder %s719_s21, %s712_s7 }
  0x37   : > { %p716_p5 = pneg %p715_p6  ;;  %p722_p4 = por %p721_p3, %p720_p2 }
  0x39   : > { %p723_p8 = pnand %p722_p4, %p716_p5 }
  0x3b   : > { %726 = shalt.err (!%p723_p8)
}
  0x3c   : > { %616 = dma.hbm_to_vmem [thread:$0]  (!%p913_p10), %s911_s17, 256, %s917_s22, %s919_s25, %s798_s28, %s798_s28, %s799_s29  }
  0x3d   : > { %p1029_p1 = scmp.ne.s32.totalorder %s1024_s20, 0 }
  0x3e   : > { %s946_s26 = sand.u32 (!%p1029_p1), 1, %s787_s13   ;;  %p1030_p4 = scmp.ne.s32.totalorder (!%p1029_p1), %s1022_s18, 0 }
  0x3f   : > { %174 = sbr.rel (%p1029_p1) target bundleno = 420 (0x1a4), region = 28  ;;  %s530_s27 = sshll.u32 (!%p1029_p1), %s946_s26, 4 }
  0x40   : > { %s177_s30 = scalar_lea.sflag (!%p1029_p1), [#allocation3], %s946_s26  ;;  %s180_s23 = scalar_lea.vmem (!%p1029_p1), [#allocation2], %s530_s27 }
  0x44   : > { %770 = dma.done.wait (%p1030_p4), %s177_s30, 256  }
  0x45   : > { %772 = vsyncadd (%p1030_p4), %s177_s30, 4294967040  ;;  %p1031_p6 = scmp.eq.s32.totalorder %s846_s16, 0 }
  0x47   : > { %774 = dma.done.wait (%p1031_p6), [#allocation6], 1024   ;;  %p1032_p8 = pmov %p1031_p6 }
  0x48   : > { %v663_v0 = vld [vmem:[#allocation5 + $0x38] sm:$0xff]   ;;  %v664_v1 = vld [vmem:[#allocation5 + $0x30] sm:$0xff]   ;;  %v665_v2 = vld [vmem:[#allocation5 + $0x28] sm:$0xff]   ;;  %s801_s18 = smov 112   ;;  %s204_s20 = scalar_lea.vmem [#allocation7], %s530_s27 }
  0x49   : > { %776 = vsyncadd (%p1032_p8), [#allocation6], 4294966272  ;;  %581 = vmatprep.subr.bf16.mxu0 %v663_v0  ;;  %v666_v3 = vld [vmem:[#allocation5 + $0x20] sm:$0xff]   ;;  %v667_v5 = vld [vmem:[#allocation5 + $0x18] sm:$0xff]   ;;  %s410_s28 = sshll.u32 %s204_s20, 4  ;;  %s559_s29 = sshll.u32 %s846_s16, 8  ;;  %s963_s28 = int_to_ptr.vmem [resolvable:$true] %s410_s28 }
  0x4a   : > { %582 = vmatpush3.bf16.msra.mxu0 %v663_v0  ;;  %v671_v4 = vld [vmem:[%s180_s23] sm:$0xff]   ;;  %v669_v7 = vld [vmem:[#allocation5 + $0x8] sm:$0xff]   ;;  %s968_s25 = scalar_lea.hbm %s1016_s2, %s559_s29  ;;  %s392_s4 = scalar_lea.sflag [#allocation4], %s946_s26 }
  0x4b   : > { %583 = vmatprep.subr.bf16.mxu0 %v664_v1  ;;  %597 = vmatprep.mubr.bf16.mxu0 %v671_v4  ;;  %v668_v6 = vld [vmem:[#allocation5 + $0x10] sm:$0xff]   ;;  %v670_v8 = vld [vmem:[#allocation5] sm:$0xff]   ;;  %v672_v9 = vld [vmem:[%s180_s23 + $0x8] sm:$0xff]   ;;  %s727_s8 = scalar_lea.vmem %s963_s28, 256  ;;  %p1033_p10 = scmp.ne.s32.totalorder %s1027_s6, 0 }
  0x4c   : > { %p728_p3 = scmp.ne.s32.totalorder %s963_s28, %s727_s8  ;;  %s802_s9 = smov [#allocation7]  }
  0x4d   : > { %s731_s7 = sshll.u32 %s802_s9, 4  ;;  %s732_s7 = int_to_ptr.vmem [resolvable:$false] %s731_s7 }
  0x4e   : > { %584 = vmatpush3.bf16.msra.mxu0 %v664_v1  ;;  %p729_p7 = pnand %p728_p3, %p1033_p10  ;;  %s733_s10 = scalar_lea.vmem %s732_s7, 512 }
  0x4f   : > { %585 = vmatprep.subr.bf16.mxu0 %v665_v2  ;;  %p734_p11 = scmp.lt.s32.totalorder %s963_s28, %s732_s7  ;;  %p735_p12 = scmp.lt.s32.totalorder %s733_s10, %s727_s8 }
  0x50   : > { %p730_p9 = pneg %p729_p7 }
  0x51   : > { %p736_p13 = por %p735_p12, %p734_p11 }
  0x52   : > { %586 = vmatpush3.bf16.msra.mxu0 %v665_v2 }
  0x53   : > { %587 = vmatprep.subr.bf16.mxu0 %v666_v3  ;;  %p737_p0 = pnand %p736_p13, %p730_p9 }
  0x56   : > { %588 = vmatpush3.bf16.msra.mxu0 %v666_v3 }
  0x57   : > { %589 = vmatprep.subr.bf16.mxu0 %v667_v5 }
  0x5a   : > { %590 = vmatpush3.bf16.msra.mxu0 %v667_v5 }
  0x5b   : > { %591 = vmatprep.subr.bf16.mxu0 %v668_v6 }
  0x5e   : > { %592 = vmatpush3.bf16.msra.mxu0 %v668_v6 }
  0x5f   : > { %593 = vmatprep.subr.bf16.mxu0 %v669_v7 }
  0x62   : > { %594 = vmatpush3.bf16.msra.mxu0 %v669_v7 }
  0x63   : > { %595 = vmatprep.subr.bf16.mxu0 %v670_v8 }
  0x66   : > { %596 = vmatpush3.bf16.msra.mxu0 %v670_v8 }
  0x69   : > { %598 = vmatmul.mubr.bf16.vlgmr.msra.gmra.mxu0 %v672_v9 }
 0x129   : > { %v599_v10 = vpop.f32.mrf.mxu0 }
 0x12a   : > { %378 = vrot.lane.b32.xlu1 %v599_v10, %s801_s18 }
 0x12b   : > { %v335_v11 = vpop.f32.mrf.mxu0 }
 0x12c   : > { %374 = vrot.lane.b32.xlu0 %v335_v11, %s801_s18 }
 0x12d   : > { %v600_v12 = vpop.f32.mrf.mxu0 }
 0x12e   : > { %v568_v13 = vpack.c.bf16 %v600_v12, %v599_v10  ;;  %380 = vrot.lane.b32.xlu1 %v600_v12, %s801_s18 }
 0x12f   : > { %v338_v14 = vpop.f32.mrf.mxu0 }
 0x130   : > { %570 = vst [vmem:[%s204_s20 + $0x8] sm:$0xff] %v568_v13   ;;  %v563_v15 = vpack.c.bf16 %v338_v14, %v335_v11  ;;  %376 = vrot.lane.b32.xlu0 %v338_v14, %s801_s18 }
 0x132   : > { %564 = vst [vmem:[%s204_s20] sm:$0xff] %v563_v15  }
 0x133   : > { %740 = shalt.err (!%p737_p0)
}
 0x134   : > { %s741_s11 = scalar_lea.hbm %s968_s25, 256  ;;  %s745_s30 = scalar_lea.hbm %s1016_s2, 1024 }
 0x135   : > { %p742_p5 = scmp.ne.s32.totalorder %s968_s25, %s741_s11  ;;  %p746_p4 = scmp.lt.s32.totalorder %s968_s25, %s1016_s2 }
 0x136   : > { %p747_p6 = scmp.lt.s32.totalorder %s745_s30, %s741_s11 }
 0x137   : > { %p743_p2 = pnand %p742_p5, %p1033_p10 }
 0x138   : > { %p748_p8 = por %p747_p6, %p746_p4 }
 0x139   : > { %p744_p1 = pneg %p743_p2 }
 0x13b   : > { %p749_p3 = pnand %p748_p8, %p744_p1 }
 0x13d   : > { %752 = shalt.err (!%p749_p3)
}
 0x13e   : > { %s803_s20 = smov 64   ;;  %s804_s29 = smov 4   ;;  %vm386_vm0 = vcmask 15360  }
 0x13f   : > { %607 = dma.vmem_to_hbm [thread:$0]  (%p1033_p10), %s963_s28, 256, %s968_s25, %s392_s4, %s803_s20, %s803_s20, %s804_s29  }
 0x140   : > { %s533_s17 = sshll.u32 %s846_s16, 2 }
 0x141   : > { %p215_p7 = scmp.lt.s32.totalorder %s533_s17, 15 }
 0x143   : > { %s1040_s17 = smov (!%p215_p7, %s533_s17), 15 }
 0x144   : > { %s534_s22 = sshll.u32 %s1040_s17, 3 }
 0x145   : > { %s218_s7 = scalar_lea.vmem %s1017_s3, %s534_s22 }
 0x19c   : > { %v379_v16 = vpop.permute.xlu1 %378 }
 0x19d   : > { %389 = vst.msk [vmem:[%s218_s7 + $0x10] sm:$0xff] %vm386_vm0, %v379_v16 }
 0x19e   : > { %v375_v17 = vpop.permute.xlu0 %374 }
 0x19f   : > { %387 = vst.msk [vmem:[%s218_s7] sm:$0xff] %vm386_vm0, %v375_v17 }
 0x1a0   : > { %v381_v18 = vpop.permute.xlu1 %380 }
 0x1a1   : > { %390 = vst.msk [vmem:[%s218_s7 + $0x18] sm:$0xff] %vm386_vm0, %v381_v18 }
 0x1a2   : > { %v377_v19 = vpop.permute.xlu0 %376 }
 0x1a3   : > { %388 = vst.msk [vmem:[%s218_s7 + $0x8] sm:$0xff] %vm386_vm0, %v377_v19 }
 0x1a4 PF: > { %p624_p10 = scmp.ge.s32.totalorder %s795_s15, 2  ;;  %s429_s16 = sand.u32 1, %s783_s12  }
 0x1a5   : > { %p1034_p9 = scmp.ne.s32.totalorder %s1023_s19, 0  ;;  %s430_s6 = scalar_lea.sflag [#allocation4], %s429_s16 }
 0x1a7   : > { %p618_p11 = pnand %p624_p10, %p1034_p9 }
 0x1a9   : > { %p619_p12 = pneg %p618_p11 }
 0x1ab   : > { %778 = dma.done.wait (%p619_p12), %s430_s6, 256  }
 0x1ac   : > { %780 = vsyncadd (%p619_p12), %s430_s6, 4294967040  ;;  %p18_p13 = scmp.ge.s32.totalorder %s878_s24, 6   ;;  %s1035_s12 = smov %s787_s13 }
 0x1ad   : > { %s1036_s13 = smov %s791_s14  ;;  %s1037_s14 = smov %s898_s5 }
 0x1ae   : > { %s1038_s15 = smov %s878_s24  ;;  %20 = sbr.rel (!%p18_p13) target bundleno = 6 (0x6), region = 89 }
 0x1b3   :  { %443 = vsyncpa [#allocation3], 1 }
 0x1b4   :  { %445 = vsyncpa [#allocation3 + $0x1], 1 }
 0x1b5   :  { %446 = vsyncpa [#allocation6], 1 }
 0x1b6   :  { %447 = vsyncpa [#allocation4], 1 }
 0x1b7   :  { %449 = vsyncpa [#allocation4 + $0x1], 1 }

</bundles_post_ra>
